<compile_context>
chip_gen: v7x
topology: tpu7x:2x2x1
jax: 0.10.0
libtpu: 0.0.40
codegen_flags: <defaults>
</compile_context>

<pallas_src>
import jax
import jax.numpy as jnp
from jax.experimental import pallas as pl
from jax.experimental.pallas import tpu as pltpu


# ------------------------------ kernels -------------------------------------

def _conv_stats_kernel(patch_ref, w_ref, conv_ref, sum_ref, sq_ref):
    """Phase 1: conv-as-matmul (bf16 MXU, f32 accumulate) for one M-tile,
    plus per-channel sum / sum-of-squares accumulation across M-tiles."""
    @pl.when(pl.program_id(0) == 0)
    def _():
        sum_ref[...] = jnp.zeros_like(sum_ref)
        sq_ref[...] = jnp.zeros_like(sq_ref)

    acc = jnp.dot(patch_ref[...], w_ref[...],
                  preferred_element_type=jnp.float32)        # (TM, Cp) f32
    conv_ref[...] = acc
    sum_ref[...] += jnp.sum(acc, axis=0, keepdims=True)      # (1, Cp)
    sq_ref[...] += jnp.sum(acc * acc, axis=0, keepdims=True)  # (1, Cp)


def _bn_relu_kernel(conv_ref, scale_ref, shift_ref, o_ref):
    """Phase 2: y = max(conv * scale + shift, 0) — one FMA + max per element."""
    y = conv_ref[...] * scale_ref[...] + shift_ref[...]
    o_ref[...] = jnp.maximum(y, 0.0).astype(o_ref.dtype)


# ------------------------------ wrapper --------------------------------------

def _im2col_nhwc(x_nhwc, kh, kw, sh, sw, ph, pw):
    """Extract conv patches; ordering of last dim is (kh, kw, cin)."""
    n, h, w, c = x_nhwc.shape
    xp = jnp.pad(x_nhwc, ((0, 0), (ph, ph), (pw, pw), (0, 0)))
    oh = (h + 2 * ph - kh) // sh + 1
    ow = (w + 2 * pw - kw) // sw + 1
    cols = []
    for i in range(kh):
        for j in range(kw):
            cols.append(xp[:, i:i + sh * oh:sh, j:j + sw * ow:sw, :])
    patches = jnp.concatenate(cols, axis=-1)                 # (N, OH, OW, kh*kw*C)
    return patches.reshape(n * oh * ow, kh * kw * c), oh, ow


def conv_bn_activation(x_nchw, weight_oihw, bias, gamma, beta,
                       stride=(1, 1), padding=(0, 0), eps=1e-5, tm=256):
    """Fused Conv2d + BatchNorm2d(train) + ReLU.  Input/output are NCHW f32."""
    n, cin, h, w = x_nchw.shape
    cout, _, kh, kw = weight_oihw.shape
    sh, sw = stride
    ph, pw = padding

    # A per-channel bias added before train-mode BN cancels exactly in
    # (x - mean); kept in the signature for API parity with nn.Conv2d.
    del bias

    # ---- glue (layout only): NCHW -> NHWC, bf16, im2col -------------------
    # TODO(synk): fuse patch extraction into the kernel (halo DMA of NHWC row
    # tiles) to eliminate the KH*KW x HBM inflation of the materialized patches.
    x_nhwc = jnp.transpose(x_nchw, (0, 2, 3, 1)).astype(jnp.bfloat16)
    patches, oh, ow = _im2col_nhwc(x_nhwc, kh, kw, sh, sw, ph, pw)
    m, k = patches.shape

    # Lane-dense output channels: pad Cout up to a multiple of 128.
    cp = ((cout + 127) // 128) * 128
    # Tile M; pad with zero rows (they contribute 0 to the batch statistics).
    tm = min(tm, max(8, ((m + 7) // 8) * 8))
    m_pad = ((m + tm - 1) // tm) * tm
    num_tiles = m_pad // tm

    patches_p = jnp.pad(patches, ((0, m_pad - m), (0, 0)))   # bf16 (M_pad, K)

    w2d = jnp.transpose(weight_oihw, (2, 3, 1, 0)).reshape(k, cout)
    w2d = jnp.pad(w2d, ((0, 0), (0, cp - cout))).astype(jnp.bfloat16)

    # ---- phase 1: conv tiles + per-channel sum / sum-of-squares -----------
    conv2d, csum, csq = pl.pallas_call(
        _conv_stats_kernel,
        out_shape=(
            jax.ShapeDtypeStruct((m_pad, cp), jnp.float32),
            jax.ShapeDtypeStruct((1, cp), jnp.float32),
            jax.ShapeDtypeStruct((1, cp), jnp.float32),
        ),
        grid=(num_tiles,),
        in_specs=[
            pl.BlockSpec((tm, k), lambda i: (i, 0)),
            pl.BlockSpec((k, cp), lambda i: (0, 0)),
        ],
        out_specs=(
            pl.BlockSpec((tm, cp), lambda i: (i, 0)),
            pl.BlockSpec((1, cp), lambda i: (0, 0)),
            pl.BlockSpec((1, cp), lambda i: (0, 0)),
        ),
        compiler_params=pltpu.CompilerParams(
            dimension_semantics=("arbitrary",),
            vmem_limit_bytes=32 * 1024 * 1024),
    )(patches_p, w2d)

    # ---- per-channel finalize (tiny, plain JAX) ----------------------------
    inv_m = 1.0 / float(m)
    mean = csum * inv_m
    var = jnp.maximum(csq * inv_m - mean * mean, 0.0)
    inv_std = jax.lax.rsqrt(var + eps)
    gamma_p = jnp.pad(gamma.astype(jnp.float32), (0, cp - cout)).reshape(1, cp)
    beta_p = jnp.pad(beta.astype(jnp.float32), (0, cp - cout)).reshape(1, cp)
    scale = gamma_p * inv_std                 # (1, Cp)
    shift = beta_p - mean * scale             # (1, Cp)

    # ---- phase 2: normalize + ReLU (independent M tiles -> "parallel") ----
    out2d = pl.pallas_call(
        _bn_relu_kernel,
        out_shape=jax.ShapeDtypeStruct((m_pad, cp), jnp.float32),
        grid=(num_tiles,),
        in_specs=[
            pl.BlockSpec((tm, cp), lambda i: (i, 0)),
            pl.BlockSpec((1, cp), lambda i: (0, 0)),
            pl.BlockSpec((1, cp), lambda i: (0, 0)),
        ],
        out_specs=pl.BlockSpec((tm, cp), lambda i: (i, 0)),
        compiler_params=pltpu.CompilerParams(
            dimension_semantics=("parallel",),
            vmem_limit_bytes=32 * 1024 * 1024),
    )(conv2d, scale, shift)

    # ---- back to NCHW ------------------------------------------------------
    out_nhwc = out2d[:m, :cout].reshape(n, oh, ow, cout)
    # TODO(synk): return NHWC (or fold NCHW into the store layout) to avoid
    # this extra full-output HBM round trip when the surrounding model allows.
    return jnp.transpose(out_nhwc, (0, 3, 1, 2))


# ------------------------------ reference ------------------------------------

def _reference(x, w, b, gamma, beta, stride, padding, eps=1e-5):
    conv = jax.lax.conv_general_dilated(
        x, w, window_strides=stride,
        padding=[(padding[0], padding[0]), (padding[1], padding[1])],
        dimension_numbers=("NCHW", "OIHW", "NCHW"),
    ) + b[None, :, None, None]
    mean = conv.mean(axis=(0, 2, 3), keepdims=True)
    var = conv.var(axis=(0, 2, 3), keepdims=True)
    y = gamma[None, :, None, None] * (conv - mean) / jnp.sqrt(var + eps) \
        + beta[None, :, None, None]
    return jnp.maximum(y, 0.0)


if __name__ == "__main__":
    key = jax.random.PRNGKey(0)
    k_x, k_w, k_b, k_g, k_be = jax.random.split(key, 5)

    N, Cin, H, W = 2, 4, 16, 16
    Cout, KH, KW = 8, 3, 3
    stride, padding = (1, 1), (1, 1)

    x = jax.random.normal(k_x, (N, Cin, H, W), jnp.float32)
    fan_in = Cin * KH * KW
    bound = 1.0 / (fan_in ** 0.5)
    weight = jax.random.uniform(k_w, (Cout, Cin, KH, KW), jnp.float32,
                                -bound, bound)
    bias = jax.random.uniform(k_b, (Cout,), jnp.float32, -bound, bound)
    gamma = 1.0 + 0.1 * jax.random.normal(k_g, (Cout,), jnp.float32)
    beta = 0.1 * jax.random.normal(k_be, (Cout,), jnp.float32)

    @jax.jit
    def fwd(x_, w_, b_, g_, be_):
        return conv_bn_activation(x_, w_, b_, g_, be_,
                                  stride=stride, padding=padding)

    out = jax.block_until_ready(fwd(x, weight, bias, gamma, beta))

    ref = _reference(x, weight, bias, gamma, beta, stride, padding)
    assert out.shape == (N, Cout, H, W), out.shape
    # bf16 MXU operands (f32 accumulate) -> ~1e-2-level tolerance.
    assert jnp.allclose(out, ref, atol=3e-2, rtol=3e-2), \
        float(jnp.max(jnp.abs(out - ref)))

    print("KERNEL_OK")
</pallas_src>

<mosaic_0001>
module attributes {stable_mosaic.version = 11 : i64} {
  func.func @_conv_stats_kernel(%arg0: i32, %arg1: memref<256x36xbf16, #tpu.memory_space<vmem>>, %arg2: memref<36x128xbf16, #tpu.memory_space<vmem>>, %arg3: memref<256x128xf32, #tpu.memory_space<vmem>>, %arg4: memref<1x128xf32, #tpu.memory_space<vmem>>, %arg5: memref<1x128xf32, #tpu.memory_space<vmem>>) attributes {dimension_semantics = [#tpu.dimension_semantics<arbitrary>], iteration_bounds = array<i64: 2>, scalar_prefetch = 0 : i64, scratch_operands = 0 : i64, tpu.core_type = #tpu.core_type<tc>, window_params = [{transform_indices = @transform_0, window_bounds = array<i64: 256, 36>}, {pipeline_mode = #tpu.pipeline_mode<synchronous>, transform_indices = @transform_1, window_bounds = array<i64: 36, 128>}, {transform_indices = @transform_2, window_bounds = array<i64: 256, 128>}, {pipeline_mode = #tpu.pipeline_mode<synchronous>, transform_indices = @transform_3, window_bounds = array<i64: 1, 128>}, {pipeline_mode = #tpu.pipeline_mode<synchronous>, transform_indices = @transform_4, window_bounds = array<i64: 1, 128>}]} {
    %c0_i32 = arith.constant 0 : i32
    %0 = arith.cmpi eq, %arg0, %c0_i32 : i32
    %1 = arith.extui %0 : i1 to i32
    %c0_i32_0 = arith.constant 0 : i32
    %2 = arith.cmpi ne, %1, %c0_i32_0 : i32
    scf.if %2 {
      %cst_16 = arith.constant 0.000000e+00 : f32
      %18 = vector.broadcast %cst_16 : f32 to vector<1x128xf32>
      %c0_17 = arith.constant 0 : index
      %c0_18 = arith.constant 0 : index
      %19 = vector.load %arg4[%c0_17, %c0_18] : memref<1x128xf32, #tpu.memory_space<vmem>>, vector<1x128xf32>
      tpu.vector_store %arg4[%c0_17, %c0_18], %18 {strides = array<i32>} : memref<1x128xf32, #tpu.memory_space<vmem>>, vector<1x128xf32>,
      %cst_19 = arith.constant 0.000000e+00 : f32
      %20 = vector.broadcast %cst_19 : f32 to vector<1x128xf32>
      %c0_20 = arith.constant 0 : index
      %c0_21 = arith.constant 0 : index
      %21 = vector.load %arg5[%c0_20, %c0_21] : memref<1x128xf32, #tpu.memory_space<vmem>>, vector<1x128xf32>
      tpu.vector_store %arg5[%c0_20, %c0_21], %20 {strides = array<i32>} : memref<1x128xf32, #tpu.memory_space<vmem>>, vector<1x128xf32>,
    } else {
    }
    %c0 = arith.constant 0 : index
    %c0_1 = arith.constant 0 : index
    %3 = vector.load %arg1[%c0, %c0_1] : memref<256x36xbf16, #tpu.memory_space<vmem>>, vector<256x36xbf16>
    %c0_2 = arith.constant 0 : index
    %c0_3 = arith.constant 0 : index
    %4 = vector.load %arg2[%c0_2, %c0_3] : memref<36x128xbf16, #tpu.memory_space<vmem>>, vector<36x128xbf16>
    %cst = arith.constant dense<0.000000e+00> : vector<256x128xf32>
    %5 = tpu.matmul %3, %4, %cst {dimension_numbers = #tpu.dot_dimension_numbers<[1], [0], [0], [1], [0, 0, 1, 1], [], []>} : vector<256x36xbf16>, vector<36x128xbf16>, vector<256x128xf32> -> vector<256x128xf32>
    %c0_4 = arith.constant 0 : index
    %c0_5 = arith.constant 0 : index
    %6 = vector.load %arg3[%c0_4, %c0_5] : memref<256x128xf32, #tpu.memory_space<vmem>>, vector<256x128xf32>
    tpu.vector_store %arg3[%c0_4, %c0_5], %5 {strides = array<i32>} : memref<256x128xf32, #tpu.memory_space<vmem>>, vector<256x128xf32>,
    %c0_6 = arith.constant 0 : index
    %c0_7 = arith.constant 0 : index
    %7 = vector.load %arg4[%c0_6, %c0_7] : memref<1x128xf32, #tpu.memory_space<vmem>>, vector<1x128xf32>
    %cst_8 = arith.constant dense<0.000000e+00> : vector<128xf32>
    %8 = vector.multi_reduction <add>, %5, %cst_8 [0] : vector<256x128xf32> to vector<128xf32>
    %9 = vector.shape_cast %8 : vector<128xf32> to vector<1x128xf32>
    %10 = arith.addf %7, %9 : vector<1x128xf32>
    %c0_9 = arith.constant 0 : index
    %c0_10 = arith.constant 0 : index
    %11 = vector.load %arg4[%c0_9, %c0_10] : memref<1x128xf32, #tpu.memory_space<vmem>>, vector<1x128xf32>
    tpu.vector_store %arg4[%c0_9, %c0_10], %10 {strides = array<i32>} : memref<1x128xf32, #tpu.memory_space<vmem>>, vector<1x128xf32>,
    %c0_11 = arith.constant 0 : index
    %c0_12 = arith.constant 0 : index
    %12 = vector.load %arg5[%c0_11, %c0_12] : memref<1x128xf32, #tpu.memory_space<vmem>>, vector<1x128xf32>
    %13 = arith.mulf %5, %5 : vector<256x128xf32>
    %cst_13 = arith.constant dense<0.000000e+00> : vector<128xf32>
    %14 = vector.multi_reduction <add>, %13, %cst_13 [0] : vector<256x128xf32> to vector<128xf32>
    %15 = vector.shape_cast %14 : vector<128xf32> to vector<1x128xf32>
    %16 = arith.addf %12, %15 : vector<1x128xf32>
    %c0_14 = arith.constant 0 : index
    %c0_15 = arith.constant 0 : index
    %17 = vector.load %arg5[%c0_14, %c0_15] : memref<1x128xf32, #tpu.memory_space<vmem>>, vector<1x128xf32>
    tpu.vector_store %arg5[%c0_14, %c0_15], %16 {strides = array<i32>} : memref<1x128xf32, #tpu.memory_space<vmem>>, vector<1x128xf32>,
    return
  }
  func.func @transform_0(%arg0: i32) -> (i32, i32) {
    %c0_i32 = arith.constant 0 : i32
    %c0_i32_0 = arith.constant 0 : i32
    return %arg0, %c0_i32 : i32, i32
  }
  func.func @transform_1(%arg0: i32) -> (i32, i32) {
    %c0_i32 = arith.constant 0 : i32
    %c0_i32_0 = arith.constant 0 : i32
    %c0_i32_1 = arith.constant 0 : i32
    return %c0_i32, %c0_i32_0 : i32, i32
  }
  func.func @transform_2(%arg0: i32) -> (i32, i32) {
    %c0_i32 = arith.constant 0 : i32
    %c0_i32_0 = arith.constant 0 : i32
    return %arg0, %c0_i32 : i32, i32
  }
  func.func @transform_3(%arg0: i32) -> (i32, i32) {
    %c0_i32 = arith.constant 0 : i32
    %c0_i32_0 = arith.constant 0 : i32
    %c0_i32_1 = arith.constant 0 : i32
    return %c0_i32, %c0_i32_0 : i32, i32
  }
  func.func @transform_4(%arg0: i32) -> (i32, i32) {
    %c0_i32 = arith.constant 0 : i32
    %c0_i32_0 = arith.constant 0 : i32
    %c0_i32_1 = arith.constant 0 : i32
    return %c0_i32, %c0_i32_0 : i32, i32
  }
}

module attributes {stable_mosaic.version = 11 : i64} {
  func.func @_bn_relu_kernel(%arg0: i32, %arg1: memref<256x128xf32, #tpu.memory_space<vmem>>, %arg2: memref<1x128xf32, #tpu.memory_space<vmem>>, %arg3: memref<1x128xf32, #tpu.memory_space<vmem>>, %arg4: memref<256x128xf32, #tpu.memory_space<vmem>>) attributes {dimension_semantics = [#tpu.dimension_semantics<parallel>], iteration_bounds = array<i64: 2>, scalar_prefetch = 0 : i64, scratch_operands = 0 : i64, tpu.core_type = #tpu.core_type<tc>, window_params = [{transform_indices = @transform_0, window_bounds = array<i64: 256, 128>}, {pipeline_mode = #tpu.pipeline_mode<synchronous>, transform_indices = @transform_1, window_bounds = array<i64: 1, 128>}, {pipeline_mode = #tpu.pipeline_mode<synchronous>, transform_indices = @transform_2, window_bounds = array<i64: 1, 128>}, {transform_indices = @transform_3, window_bounds = array<i64: 256, 128>}]} {
    %c0 = arith.constant 0 : index
    %c0_0 = arith.constant 0 : index
    %0 = vector.load %arg1[%c0, %c0_0] : memref<256x128xf32, #tpu.memory_space<vmem>>, vector<256x128xf32>
    %c0_1 = arith.constant 0 : index
    %c0_2 = arith.constant 0 : index
    %1 = vector.load %arg2[%c0_1, %c0_2] : memref<1x128xf32, #tpu.memory_space<vmem>>, vector<1x128xf32>
    %2 = vector.broadcast %1 : vector<1x128xf32> to vector<256x128xf32>
    %3 = arith.mulf %0, %2 : vector<256x128xf32>
    %c0_3 = arith.constant 0 : index
    %c0_4 = arith.constant 0 : index
    %4 = vector.load %arg3[%c0_3, %c0_4] : memref<1x128xf32, #tpu.memory_space<vmem>>, vector<1x128xf32>
    %5 = vector.broadcast %4 : vector<1x128xf32> to vector<256x128xf32>
    %6 = arith.addf %3, %5 : vector<256x128xf32>
    %cst = arith.constant 0.000000e+00 : f32
    %7 = vector.broadcast %cst : f32 to vector<256x128xf32>
    %8 = arith.maximumf %6, %7 : vector<256x128xf32>
    %c0_5 = arith.constant 0 : index
    %c0_6 = arith.constant 0 : index
    %9 = vector.load %arg4[%c0_5, %c0_6] : memref<256x128xf32, #tpu.memory_space<vmem>>, vector<256x128xf32>
    tpu.vector_store %arg4[%c0_5, %c0_6], %8 {strides = array<i32>} : memref<256x128xf32, #tpu.memory_space<vmem>>, vector<256x128xf32>,
    return
  }
  func.func @transform_0(%arg0: i32) -> (i32, i32) {
    %c0_i32 = arith.constant 0 : i32
    %c0_i32_0 = arith.constant 0 : i32
    return %arg0, %c0_i32 : i32, i32
  }
  func.func @transform_1(%arg0: i32) -> (i32, i32) {
    %c0_i32 = arith.constant 0 : i32
    %c0_i32_0 = arith.constant 0 : i32
    %c0_i32_1 = arith.constant 0 : i32
    return %c0_i32, %c0_i32_0 : i32, i32
  }
  func.func @transform_2(%arg0: i32) -> (i32, i32) {
    %c0_i32 = arith.constant 0 : i32
    %c0_i32_0 = arith.constant 0 : i32
    %c0_i32_1 = arith.constant 0 : i32
    return %c0_i32, %c0_i32_0 : i32, i32
  }
  func.func @transform_3(%arg0: i32) -> (i32, i32) {
    %c0_i32 = arith.constant 0 : i32
    %c0_i32_0 = arith.constant 0 : i32
    return %arg0, %c0_i32 : i32, i32
  }
}

</mosaic_0001>

<bundles_post_ra>
// kernel: fwd.3
= control target key start
LH: loop header
LB: loop body
LE: loop exit
PB: predicated region body
PF: predicated region fallthrough
CT: control target
= control target key end

     0   :  { %s453_s12 = smov 0   ;;  %s612_s0 = inlined_call_operand.vmem [shape: f32[512,128], index: 0, kind: input, shape index: {}]   ;;  %s613_s1 = inlined_call_operand.vmem [shape: f32[1,128], index: 1, kind: input, shape index: {}]   ;;  %s614_s2 = inlined_call_operand.vmem [shape: f32[1,128], index: 2, kind: input, shape index: {}]   ;;  %s615_s3 = inlined_call_operand.vmem [shape: f32[512,128], index: 3, kind: output, shape index: {}]  }
   0x1 LB: > { %s404_s13 = sadd.s32 4294967295, %s431_s12   ;;  %p408_p0 = scmp.ge.s32.totalorder %s431_s12, 1  ;;  %s431_s12 = sphi %s453_s12, %s13_s12  }
   0x2   : > { %p138_p1 = scmp.lt.s32.totalorder %s431_s12, 3 }
   0x4   : > { %p139_p2 = pnand %p408_p0, %p138_p1 }
   0x5   : > { %s409_s14 = sshll.u32 (!%p139_p2), %s404_s13, 5  ;;  %v464_v0 = vld [vmem:[%s613_s1] ss:$0 sm:$0xff] (!%p139_p2) }
   0x6   : > { %142 = sbr.rel (%p139_p2) target bundleno = 46 (0x2e), region = 32  ;;  %p163_p3 = scmp.lt.s32.totalorder (!%p139_p2), %s409_s14, 63  ;;  %v474_v1 = vld [vmem:[%s614_s2] ss:$0 sm:$0xff] (!%p139_p2) }
   0xd   : > { %s617_s14 = smov (!%p163_p3, %s409_s14), 63 }
   0xe   : > { %s410_s15 = sshll.u32 %s617_s14, 3 }
   0xf   : > { %s469_s20 = scalar_lea.vmem %s612_s0, %s410_s15  ;;  %s497_s25 = scalar_lea.vmem %s615_s3, %s410_s15 }
  0x10   : > { %v174_v2 = vld [vmem:[%s469_s20] sm:$0xff]  ;;  %v175_v3 = vld [vmem:[%s469_s20 + $0x8] sm:$0xff]  ;;  %v176_v4 = vld [vmem:[%s469_s20 + $0x10] sm:$0xff] }
  0x11   : > { %v213_v5 = vmul.f32 %v464_v0, %v174_v2  ;;  %v214_v6 = vmul.f32 %v464_v0, %v175_v3  ;;  %v215_v7 = vmul.f32 %v464_v0, %v176_v4  ;;  %v177_v8 = vld [vmem:[%s469_s20 + $0x18] sm:$0xff]  ;;  %v178_v9 = vld [vmem:[%s469_s20 + $0x20] sm:$0xff]  ;;  %v179_v10 = vld [vmem:[%s469_s20 + $0x28] sm:$0xff] }
  0x12   : > { %v216_v11 = vmul.f32 %v464_v0, %v177_v8  ;;  %v217_v12 = vmul.f32 %v464_v0, %v178_v9  ;;  %v218_v13 = vmul.f32 %v464_v0, %v179_v10  ;;  %v180_v14 = vld [vmem:[%s469_s20 + $0x30] sm:$0xff]  ;;  %v181_v15 = vld [vmem:[%s469_s20 + $0x38] sm:$0xff]  ;;  %v182_v24 = vld [vmem:[%s469_s20 + $0x40] sm:$0xff] }
  0x13   : > { %v252_v16 = vadd.f32 %v474_v1, %v213_v5  ;;  %v253_v17 = vadd.f32 %v474_v1, %v214_v6  ;;  %v254_v18 = vadd.f32 %v474_v1, %v215_v7  ;;  %v219_v19 = vmul.f32 %v464_v0, %v180_v14  ;;  %v183_v25 = vld [vmem:[%s469_s20 + $0x48] sm:$0xff]  ;;  %v184_v26 = vld [vmem:[%s469_s20 + $0x50] sm:$0xff]  ;;  %v185_v31 = vld [vmem:[%s469_s20 + $0x58] sm:$0xff] }
  0x14   : > { %v255_v20 = vadd.f32 %v474_v1, %v216_v11  ;;  %v256_v21 = vadd.f32 %v474_v1, %v217_v12  ;;  %v257_v22 = vadd.f32 %v474_v1, %v218_v13  ;;  %v220_v23 = vmul.f32 %v464_v0, %v181_v15  ;;  %v186_v32 = vld [vmem:[%s469_s20 + $0x60] sm:$0xff]  ;;  %v187_v33 = vld [vmem:[%s469_s20 + $0x68] sm:$0xff]  ;;  %v188_v38 = vld [vmem:[%s469_s20 + $0x70] sm:$0xff] }
  0x15   : > { %v284_v27 = vmax.f32 %v252_v16, 0.0  ;;  %v285_v28 = vmax.f32 %v253_v17, 0.0  ;;  %v286_v29 = vmax.f32 %v254_v18, 0.0  ;;  %v258_v30 = vadd.f32 %v474_v1, %v219_v19  ;;  %v189_v43 = vld [vmem:[%s469_s20 + $0x78] sm:$0xff]  ;;  %v190_v56 = vld [vmem:[%s469_s20 + $0x80] sm:$0xff]  ;;  %v191_v57 = vld [vmem:[%s469_s20 + $0x88] sm:$0xff] }
  0x16   : > { %v287_v34 = vmax.f32 %v255_v20, 0.0  ;;  %v288_v35 = vmax.f32 %v256_v21, 0.0  ;;  %v289_v36 = vmax.f32 %v257_v22, 0.0  ;;  %v259_v37 = vadd.f32 %v474_v1, %v220_v23  ;;  %v192_v58 = vld [vmem:[%s469_s20 + $0x90] sm:$0xff]  ;;  %v193_v63 = vld [vmem:[%s469_s20 + $0x98] sm:$0xff]  ;;  %v194_v2 = vld [vmem:[%s469_s20 + $0xa0] sm:$0xff] }
  0x17   : > { %316 = vst [vmem:[%s497_s25] sm:$0xff] %v284_v27  ;;  %317 = vst [vmem:[%s497_s25 + $0x8] sm:$0xff] %v285_v28  ;;  %v290_v39 = vmax.f32 %v258_v30, 0.0  ;;  %v221_v40 = vmul.f32 %v464_v0, %v182_v24  ;;  %v222_v41 = vmul.f32 %v464_v0, %v183_v25  ;;  %v223_v42 = vmul.f32 %v464_v0, %v184_v26  ;;  %v195_v3 = vld [vmem:[%s469_s20 + $0xa8] sm:$0xff]  ;;  %v196_v8 = vld [vmem:[%s469_s20 + $0xb0] sm:$0xff] }
  0x18   : > { %318 = vst [vmem:[%s497_s25 + $0x10] sm:$0xff] %v286_v29  ;;  %319 = vst [vmem:[%s497_s25 + $0x18] sm:$0xff] %v287_v34  ;;  %v291_v44 = vmax.f32 %v259_v37, 0.0  ;;  %v224_v45 = vmul.f32 %v464_v0, %v185_v31  ;;  %v225_v46 = vmul.f32 %v464_v0, %v186_v32  ;;  %v226_v47 = vmul.f32 %v464_v0, %v187_v33  ;;  %v197_v13 = vld [vmem:[%s469_s20 + $0xb8] sm:$0xff]  ;;  %v198_v26 = vld [vmem:[%s469_s20 + $0xc0] sm:$0xff] }
  0x19   : > { %320 = vst [vmem:[%s497_s25 + $0x20] sm:$0xff] %v288_v35  ;;  %321 = vst [vmem:[%s497_s25 + $0x28] sm:$0xff] %v289_v36  ;;  %v260_v48 = vadd.f32 %v474_v1, %v221_v40  ;;  %v261_v49 = vadd.f32 %v474_v1, %v222_v41  ;;  %v262_v50 = vadd.f32 %v474_v1, %v223_v42  ;;  %v199_v27 = vld [vmem:[%s469_s20 + $0xc8] sm:$0xff]  ;;  %v200_v28 = vld [vmem:[%s469_s20 + $0xd0] sm:$0xff] }
  0x1a   : > { %322 = vst [vmem:[%s497_s25 + $0x30] sm:$0xff] %v290_v39  ;;  %v227_v51 = vmul.f32 %v464_v0, %v188_v38  ;;  %323 = vst [vmem:[%s497_s25 + $0x38] sm:$0xff] %v291_v44  ;;  %v263_v52 = vadd.f32 %v474_v1, %v224_v45  ;;  %v264_v53 = vadd.f32 %v474_v1, %v225_v46  ;;  %v201_v33 = vld [vmem:[%s469_s20 + $0xd8] sm:$0xff]  ;;  %v202_v34 = vld [vmem:[%s469_s20 + $0xe0] sm:$0xff] }
  0x1b   : > { %v265_v54 = vadd.f32 %v474_v1, %v226_v47  ;;  %v228_v55 = vmul.f32 %v464_v0, %v189_v43  ;;  %v292_v59 = vmax.f32 %v260_v48, 0.0  ;;  %v293_v60 = vmax.f32 %v261_v49, 0.0  ;;  %v203_v35 = vld [vmem:[%s469_s20 + $0xe8] sm:$0xff]  ;;  %v204_v40 = vld [vmem:[%s469_s20 + $0xf0] sm:$0xff]  ;;  %v205_v45 = vld [vmem:[%s469_s20 + $0xf8] sm:$0xff] }
  0x1c   : > { %v294_v61 = vmax.f32 %v262_v50, 0.0  ;;  %v266_v62 = vadd.f32 %v474_v1, %v227_v51  ;;  %v295_v4 = vmax.f32 %v263_v52, 0.0  ;;  %v296_v5 = vmax.f32 %v264_v53, 0.0 }
  0x1d   : > { %v297_v6 = vmax.f32 %v265_v54, 0.0  ;;  %v267_v7 = vadd.f32 %v474_v1, %v228_v55  ;;  %324 = vst [vmem:[%s497_s25 + $0x40] sm:$0xff] %v292_v59  ;;  %325 = vst [vmem:[%s497_s25 + $0x48] sm:$0xff] %v293_v60  ;;  %v229_v10 = vmul.f32 %v464_v0, %v190_v56  ;;  %v230_v11 = vmul.f32 %v464_v0, %v191_v57 }
  0x1e   : > { %326 = vst [vmem:[%s497_s25 + $0x50] sm:$0xff] %v294_v61  ;;  %v298_v9 = vmax.f32 %v266_v62, 0.0  ;;  %v231_v12 = vmul.f32 %v464_v0, %v192_v58  ;;  %327 = vst [vmem:[%s497_s25 + $0x58] sm:$0xff] %v295_v4  ;;  %v232_v15 = vmul.f32 %v464_v0, %v193_v63  ;;  %v233_v16 = vmul.f32 %v464_v0, %v194_v2 }
  0x1f   : > { %328 = vst [vmem:[%s497_s25 + $0x60] sm:$0xff] %v296_v5  ;;  %329 = vst [vmem:[%s497_s25 + $0x68] sm:$0xff] %v297_v6  ;;  %v299_v14 = vmax.f32 %v267_v7, 0.0  ;;  %v234_v17 = vmul.f32 %v464_v0, %v195_v3  ;;  %v268_v18 = vadd.f32 %v474_v1, %v229_v10  ;;  %v269_v19 = vadd.f32 %v474_v1, %v230_v11 }
  0x20   : > { %330 = vst [vmem:[%s497_s25 + $0x70] sm:$0xff] %v298_v9  ;;  %v270_v20 = vadd.f32 %v474_v1, %v231_v12  ;;  %v235_v21 = vmul.f32 %v464_v0, %v196_v8  ;;  %v271_v22 = vadd.f32 %v474_v1, %v232_v15  ;;  %v272_v23 = vadd.f32 %v474_v1, %v233_v16 }
  0x21   : > { %331 = vst [vmem:[%s497_s25 + $0x78] sm:$0xff] %v299_v14  ;;  %v273_v24 = vadd.f32 %v474_v1, %v234_v17  ;;  %v236_v25 = vmul.f32 %v464_v0, %v197_v13  ;;  %v300_v29 = vmax.f32 %v268_v18, 0.0  ;;  %v301_v30 = vmax.f32 %v269_v19, 0.0 }
  0x22   : > { %v302_v31 = vmax.f32 %v270_v20, 0.0  ;;  %v274_v32 = vadd.f32 %v474_v1, %v235_v21  ;;  %v303_v36 = vmax.f32 %v271_v22, 0.0  ;;  %v304_v37 = vmax.f32 %v272_v23, 0.0 }
  0x23   : > { %v305_v38 = vmax.f32 %v273_v24, 0.0  ;;  %v275_v39 = vadd.f32 %v474_v1, %v236_v25  ;;  %332 = vst [vmem:[%s497_s25 + $0x80] sm:$0xff] %v300_v29  ;;  %333 = vst [vmem:[%s497_s25 + $0x88] sm:$0xff] %v301_v30  ;;  %v237_v42 = vmul.f32 %v464_v0, %v198_v26  ;;  %v238_v43 = vmul.f32 %v464_v0, %v199_v27 }
  0x24   : > { %334 = vst [vmem:[%s497_s25 + $0x90] sm:$0xff] %v302_v31  ;;  %v306_v41 = vmax.f32 %v274_v32, 0.0  ;;  %v239_v44 = vmul.f32 %v464_v0, %v200_v28  ;;  %335 = vst [vmem:[%s497_s25 + $0x98] sm:$0xff] %v303_v36  ;;  %v240_v47 = vmul.f32 %v464_v0, %v201_v33  ;;  %v241_v48 = vmul.f32 %v464_v0, %v202_v34 }
  0x25   : > { %336 = vst [vmem:[%s497_s25 + $0xa0] sm:$0xff] %v304_v37  ;;  %337 = vst [vmem:[%s497_s25 + $0xa8] sm:$0xff] %v305_v38  ;;  %v307_v46 = vmax.f32 %v275_v39, 0.0  ;;  %v242_v49 = vmul.f32 %v464_v0, %v203_v35  ;;  %v276_v50 = vadd.f32 %v474_v1, %v237_v42  ;;  %v277_v51 = vadd.f32 %v474_v1, %v238_v43 }
  0x26   : > { %338 = vst [vmem:[%s497_s25 + $0xb0] sm:$0xff] %v306_v41  ;;  %v278_v52 = vadd.f32 %v474_v1, %v239_v44  ;;  %v243_v53 = vmul.f32 %v464_v0, %v204_v40  ;;  %v279_v54 = vadd.f32 %v474_v1, %v240_v47  ;;  %v280_v55 = vadd.f32 %v474_v1, %v241_v48 }
  0x27   : > { %339 = vst [vmem:[%s497_s25 + $0xb8] sm:$0xff] %v307_v46  ;;  %v281_v56 = vadd.f32 %v474_v1, %v242_v49  ;;  %v244_v57 = vmul.f32 %v464_v0, %v205_v45  ;;  %v308_v58 = vmax.f32 %v276_v50, 0.0  ;;  %v309_v59 = vmax.f32 %v277_v51, 0.0 }
  0x28   : > { %v310_v60 = vmax.f32 %v278_v52, 0.0  ;;  %v282_v61 = vadd.f32 %v474_v1, %v243_v53  ;;  %v311_v62 = vmax.f32 %v279_v54, 0.0  ;;  %v312_v63 = vmax.f32 %v280_v55, 0.0 }
  0x29   : > { %v313_v2 = vmax.f32 %v281_v56, 0.0  ;;  %v283_v3 = vadd.f32 %v474_v1, %v244_v57  ;;  %340 = vst [vmem:[%s497_s25 + $0xc0] sm:$0xff] %v308_v58  ;;  %341 = vst [vmem:[%s497_s25 + $0xc8] sm:$0xff] %v309_v59 }
  0x2a   : > { %342 = vst [vmem:[%s497_s25 + $0xd0] sm:$0xff] %v310_v60  ;;  %v314_v4 = vmax.f32 %v282_v61, 0.0  ;;  %343 = vst [vmem:[%s497_s25 + $0xd8] sm:$0xff] %v311_v62 }
  0x2b   : > { %344 = vst [vmem:[%s497_s25 + $0xe0] sm:$0xff] %v312_v63  ;;  %345 = vst [vmem:[%s497_s25 + $0xe8] sm:$0xff] %v313_v2  ;;  %v315_v0 = vmax.f32 %v283_v3, 0.0 }
  0x2c   : > { %346 = vst [vmem:[%s497_s25 + $0xf0] sm:$0xff] %v314_v4 }
  0x2d   : > { %347 = vst [vmem:[%s497_s25 + $0xf8] sm:$0xff] %v315_v0 }
  0x2e PF: > { %s13_s12 = sadd.s32 1, %s431_s12  }
  0x2f   : > { %p10_p4 = scmp.ge.s32.totalorder %s13_s12, 4  }
  0x31   :  { %12 = sbr.rel (!%p10_p4) target bundleno = 1 (0x1), region = 62 }

// kernel: fwd.2
= control target key start
LH: loop header
LB: loop body
LE: loop exit
PB: predicated region body
PF: predicated region fallthrough
CT: control target
= control target key end

     0   :  { %s935_s15 = smov 0   ;;  %s1125_s0 = inlined_call_operand.vmem [shape: bf16[512,36], index: 0, kind: input, shape index: {}]   ;;  %s1126_s1 = inlined_call_operand.vmem [shape: bf16[36,128], index: 1, kind: input, shape index: {}]   ;;  %s1127_s2 = inlined_call_operand.vmem [shape: f32[512,128], index: 2, kind: output, shape index: {0}]   ;;  %s1128_s3 = inlined_call_operand.vmem [shape: f32[1,128], index: 3, kind: output, shape index: {1}]   ;;  %s1129_s4 = inlined_call_operand.vmem [shape: f32[1,128], index: 4, kind: output, shape index: {2}]  }
   0x1 LB: > { %s761_s16 = sadd.s32 4294967295, %s907_s15   ;;  %p765_p0 = scmp.ge.s32.totalorder %s907_s15, 1  ;;  %s907_s15 = sphi %s935_s15, %s15_s15  }
   0x2   : > { %p158_p1 = scmp.lt.s32.totalorder %s907_s15, 3 }
   0x4   : > { %p159_p2 = pnand %p765_p0, %p158_p1 }
   0x5   : > { %s766_s17 = sshll.u32 (!%p159_p2), %s761_s16, 5  ;;  %p770_p4 = scmp.ne.s32.totalorder (!%p159_p2), %s761_s16, 0 }
   0x6   : > { %162 = sbr.rel (%p159_p2) target bundleno = 327 (0x147), region = 28  ;;  %p185_p3 = scmp.lt.s32.totalorder (!%p159_p2), %s766_s17, 63 }
   0xd   : > { %s1131_s17 = smov (!%p185_p3, %s766_s17), 63  ;;  %200 = sbr.rel (%p770_p4) target bundleno = 20 (0x14), region = 32 }
   0xe   : > { %s767_s18 = sshll.u32 %s1131_s17, 2  ;;  %s769_s19 = sshll.u32 %s1131_s17, 3  ;;  %v909_v0 = vmov (!%p770_p4), 0.0  }
   0xf   : > { %s946_s22 = scalar_lea.vmem %s1125_s0, %s767_s18  ;;  %s951_s25 = scalar_lea.vmem %s1127_s2, %s769_s19  ;;  %201 = vst [vmem:[%s1128_s3] sm:$0x1] (!%p770_p4), %v909_v0  ;;  %202 = vst [vmem:[%s1129_s4] sm:$0x1] (!%p770_p4), %v909_v0 }
  0x14 PF: > { %v882_v1 = vld [vmem:[%s1126_s1] sm:$0xff]   ;;  %v883_v2 = vld [vmem:[%s1126_s1 + $0x8] sm:$0xff]   ;;  %vm335_vm0 = vcmask 293888   ;;  %v884_v3 = vld [vmem:[%s1126_s1 + $0x10] ss:$0 sps:$4 sm:$0x33]  }
  0x15   : > { %827 = vmatprep.subr.bf16.mxu0 %v882_v1  ;;  %v885_v4 = vld [vmem:[%s946_s22] sm:$0xff]   ;;  %865 = vmatprep.subr.bf16.mxu1 %v882_v1  ;;  %vm384_vm1 = vcmask 1041408   ;;  %v886_v6 = vld [vmem:[%s946_s22 + $0x8] sm:$0xff]   ;;  %v887_v7 = vld [vmem:[%s946_s22 + $0x10] sm:$0xff]  }
  0x16   : > { %828 = vmatpush3.bf16.msra.mxu0 %v882_v1  ;;  %868 = vmatpush3.bf16.msra.mxu1 %v882_v1  ;;  %v386_v5 = vsel %vm384_vm1, %v884_v3, 0  ;;  %v893_v8 = vld [vmem:[%s946_s22 + $0x40] sm:$0xff]   ;;  %v894_v9 = vld [vmem:[%s946_s22 + $0x48] sm:$0xff]   ;;  %v895_v10 = vld [vmem:[%s946_s22 + $0x50] sm:$0xff]  }
  0x17   : > { %829 = vmatprep.subr.bf16.mxu0 %v883_v2  ;;  %833 = vmatprep.mubr.msk.bf16.mxu0 %vm335_vm0, %v885_v4  ;;  %v888_v11 = vld [vmem:[%s946_s22 + $0x18] sm:$0xff]   ;;  %v889_v13 = vld [vmem:[%s946_s22 + $0x20] sm:$0xff]   ;;  %v890_v15 = vld [vmem:[%s946_s22 + $0x28] sm:$0xff]  }
  0x18   : > { %866 = vmatprep.subr.bf16.mxu1 %v883_v2  ;;  %849 = vmatprep.mubr.msk.bf16.mxu1 %vm335_vm0, %v893_v8  ;;  %v896_v12 = vld [vmem:[%s946_s22 + $0x58] sm:$0xff]   ;;  %v897_v14 = vld [vmem:[%s946_s22 + $0x60] sm:$0xff]   ;;  %v898_v16 = vld [vmem:[%s946_s22 + $0x68] sm:$0xff]  }
  0x19   : > { %v891_v17 = vld [vmem:[%s946_s22 + $0x30] sm:$0xff]   ;;  %v892_v19 = vld [vmem:[%s946_s22 + $0x38] sm:$0xff]  }
  0x1a   : > { %830 = vmatpush3.bf16.msra.mxu0 %v883_v2  ;;  %869 = vmatpush3.bf16.msra.mxu1 %v883_v2  ;;  %v899_v18 = vld [vmem:[%s946_s22 + $0x70] sm:$0xff]   ;;  %v900_v20 = vld [vmem:[%s946_s22 + $0x78] sm:$0xff]  }
  0x1b   : > { %871 = vmatprep.subr.msk.bf16.mxu0 %vm384_vm1, %v884_v3  ;;  %872 = vmatprep.subr.msk.bf16.mxu1 %vm384_vm1, %v884_v3 }
  0x1e   : > { %832 = vmatpush3.bf16.msra.mxu0 %v386_v5  ;;  %870 = vmatpush3.bf16.msra.mxu1 %v386_v5 }
  0x21   : > { %834 = vmatmul.mubr.msk.bf16.vlgmr.msra.gmra.mrb[0].mxu0 %vm335_vm0, %v886_v6  ;;  %850 = vmatmul.mubr.msk.bf16.vlgmr.msra.gmra.mrb[0].mxu1 %vm335_vm0, %v894_v9 }
  0x22   : > { %837 = vmatprep.mubr.msk.bf16.mxu0 %vm335_vm0, %v887_v7  ;;  %853 = vmatprep.mubr.msk.bf16.mxu1 %vm335_vm0, %v895_v10 }
  0x29   : > { %838 = vmatmul.mubr.msk.bf16.gmra.mrb[4].mxu0 %vm335_vm0, %v888_v11  ;;  %854 = vmatmul.mubr.msk.bf16.gmra.mrb[4].mxu1 %vm335_vm0, %v896_v12 }
  0x2a   : > { %841 = vmatprep.mubr.msk.bf16.mxu0 %vm335_vm0, %v889_v13  ;;  %857 = vmatprep.mubr.msk.bf16.mxu1 %vm335_vm0, %v897_v14 }
  0x31   : > { %842 = vmatmul.mubr.msk.bf16.gmra.mrb[8].mxu0 %vm335_vm0, %v890_v15  ;;  %858 = vmatmul.mubr.msk.bf16.gmra.mrb[8].mxu1 %vm335_vm0, %v898_v16 }
  0x32   : > { %845 = vmatprep.mubr.msk.bf16.mxu0 %vm335_vm0, %v891_v17  ;;  %861 = vmatprep.mubr.msk.bf16.mxu1 %vm335_vm0, %v899_v18 }
  0x39   : > { %846 = vmatmul.mubr.msk.bf16.gmra.mrb[12].mxu0 %vm335_vm0, %v892_v19  ;;  %862 = vmatmul.mubr.msk.bf16.gmra.mrb[12].mxu1 %vm335_vm0, %v900_v20 }
  0xf4   : > { %v835_v21 = vpop.f32.mrb[0].mxu0  ;;  %v1000_v22 = vpop.f32.mrb[0].mxu1 }
  0xf5   : > { %551 = vst [vmem:[%s951_s25 + $0x10] sm:$0xff] %v835_v21  ;;  %v422_v23 = vpop.f32.mrb[1].mxu0  ;;  %567 = vst [vmem:[%s951_s25 + $0x90] sm:$0xff] %v1000_v22  ;;  %v1005_v24 = vpop.f32.mrb[1].mxu1  ;;  %v624_v32 = vmul.f32 %v835_v21, %v835_v21 }
  0xf6   : > { %549 = vst [vmem:[%s951_s25] sm:$0xff] %v422_v23  ;;  %v836_v25 = vpop.f32.mrb[2].mxu0  ;;  %565 = vst [vmem:[%s951_s25 + $0x80] sm:$0xff] %v1005_v24  ;;  %v1010_v26 = vpop.f32.mrb[2].mxu1  ;;  %v622_v29 = vmul.f32 %v422_v23, %v422_v23 }
  0xf7   : > { %552 = vst [vmem:[%s951_s25 + $0x18] sm:$0xff] %v836_v25  ;;  %v425_v27 = vpop.f32.mrb[3].mxu0  ;;  %568 = vst [vmem:[%s951_s25 + $0x98] sm:$0xff] %v1010_v26  ;;  %v1015_v28 = vpop.f32.mrb[3].mxu1  ;;  %v625_v35 = vmul.f32 %v836_v25, %v836_v25 }
  0xf8   : > { %550 = vst [vmem:[%s951_s25 + $0x8] sm:$0xff] %v425_v27  ;;  %v582_v30 = vadd.f32 %v425_v27, %v422_v23  ;;  %v623_v31 = vmul.f32 %v425_v27, %v425_v27  ;;  %566 = vst [vmem:[%s951_s25 + $0x88] sm:$0xff] %v1015_v28 }
  0xfa   : > { %v583_v33 = vadd.f32 %v835_v21, %v582_v30  ;;  %v654_v34 = vadd.f32 %v623_v31, %v622_v29 }
  0xfc   : > { %v655_v36 = vadd.f32 %v654_v34, %v624_v32  ;;  %v839_v37 = vpop.f32.mrb[4].mxu0  ;;  %v584_v38 = vadd.f32 %v836_v25, %v583_v33  ;;  %v1020_v39 = vpop.f32.mrb[4].mxu1 }
  0xfd   : > { %555 = vst [vmem:[%s951_s25 + $0x30] sm:$0xff] %v839_v37  ;;  %v438_v40 = vpop.f32.mrb[5].mxu0  ;;  %571 = vst [vmem:[%s951_s25 + $0xb0] sm:$0xff] %v1020_v39  ;;  %v1025_v41 = vpop.f32.mrb[5].mxu1  ;;  %v628_v52 = vmul.f32 %v839_v37, %v839_v37 }
  0xfe   : > { %553 = vst [vmem:[%s951_s25 + $0x20] sm:$0xff] %v438_v40  ;;  %v585_v42 = vadd.f32 %v584_v38, %v438_v40  ;;  %v626_v43 = vmul.f32 %v438_v40, %v438_v40  ;;  %v656_v44 = vadd.f32 %v655_v36, %v625_v35  ;;  %v840_v45 = vpop.f32.mrb[6].mxu0  ;;  %569 = vst [vmem:[%s951_s25 + $0xa0] sm:$0xff] %v1025_v41  ;;  %v1030_v46 = vpop.f32.mrb[6].mxu1 }
  0xff   : > { %556 = vst [vmem:[%s951_s25 + $0x38] sm:$0xff] %v840_v45  ;;  %v441_v47 = vpop.f32.mrb[7].mxu0  ;;  %572 = vst [vmem:[%s951_s25 + $0xb8] sm:$0xff] %v1030_v46  ;;  %v1035_v48 = vpop.f32.mrb[7].mxu1  ;;  %v629_v55 = vmul.f32 %v840_v45, %v840_v45  ;;  %v638_v38 = vmul.f32 %v1005_v24, %v1005_v24 }
 0x100   : > { %v657_v49 = vadd.f32 %v656_v44, %v626_v43  ;;  %554 = vst [vmem:[%s951_s25 + $0x28] sm:$0xff] %v441_v47  ;;  %v586_v50 = vadd.f32 %v585_v42, %v441_v47  ;;  %v627_v51 = vmul.f32 %v441_v47, %v441_v47  ;;  %570 = vst [vmem:[%s951_s25 + $0xa8] sm:$0xff] %v1035_v48 }
 0x101   : > { %v640_v47 = vmul.f32 %v1000_v22, %v1000_v22 }
 0x102   : > { %v587_v53 = vadd.f32 %v839_v37, %v586_v50  ;;  %v658_v54 = vadd.f32 %v657_v49, %v627_v51  ;;  %v641_v51 = vmul.f32 %v1010_v26, %v1010_v26 }
 0x104   : > { %v659_v56 = vadd.f32 %v658_v54, %v628_v52  ;;  %v843_v57 = vpop.f32.mrb[8].mxu0  ;;  %v588_v58 = vadd.f32 %v840_v45, %v587_v53  ;;  %v1040_v59 = vpop.f32.mrb[8].mxu1  ;;  %v639_v45 = vmul.f32 %v1015_v28, %v1015_v28 }
 0x105   : > { %559 = vst [vmem:[%s951_s25 + $0x50] sm:$0xff] %v843_v57  ;;  %v454_v60 = vpop.f32.mrb[9].mxu0  ;;  %575 = vst [vmem:[%s951_s25 + $0xd0] sm:$0xff] %v1040_v59  ;;  %v1045_v61 = vpop.f32.mrb[9].mxu1  ;;  %v632_v8 = vmul.f32 %v843_v57, %v843_v57 }
 0x106   : > { %557 = vst [vmem:[%s951_s25 + $0x40] sm:$0xff] %v454_v60  ;;  %v589_v62 = vadd.f32 %v588_v58, %v454_v60  ;;  %v630_v63 = vmul.f32 %v454_v60, %v454_v60  ;;  %v660_v0 = vadd.f32 %v659_v56, %v629_v55  ;;  %v844_v1 = vpop.f32.mrb[10].mxu0  ;;  %573 = vst [vmem:[%s951_s25 + $0xc0] sm:$0xff] %v1045_v61  ;;  %v1050_v2 = vpop.f32.mrb[10].mxu1 }
 0x107   : > { %560 = vst [vmem:[%s951_s25 + $0x58] sm:$0xff] %v844_v1  ;;  %v457_v3 = vpop.f32.mrb[11].mxu0  ;;  %576 = vst [vmem:[%s951_s25 + $0xd8] sm:$0xff] %v1050_v2  ;;  %v1055_v4 = vpop.f32.mrb[11].mxu1  ;;  %v633_v11 = vmul.f32 %v844_v1, %v844_v1 }
 0x108   : > { %v661_v5 = vadd.f32 %v660_v0, %v630_v63  ;;  %558 = vst [vmem:[%s951_s25 + $0x48] sm:$0xff] %v457_v3  ;;  %v590_v6 = vadd.f32 %v589_v62, %v457_v3  ;;  %v631_v7 = vmul.f32 %v457_v3, %v457_v3  ;;  %574 = vst [vmem:[%s951_s25 + $0xc8] sm:$0xff] %v1055_v4 }
 0x10a   : > { %v591_v9 = vadd.f32 %v843_v57, %v590_v6  ;;  %v662_v10 = vadd.f32 %v661_v5, %v631_v7  ;;  %v643_v57 = vmul.f32 %v1035_v48, %v1035_v48  ;;  %v647_v5 = vmul.f32 %v1055_v4, %v1055_v4 }
 0x10c   : > { %v663_v12 = vadd.f32 %v662_v10, %v632_v8  ;;  %v847_v13 = vpop.f32.mrb[12].mxu0  ;;  %v592_v14 = vadd.f32 %v844_v1, %v591_v9  ;;  %v1060_v15 = vpop.f32.mrb[12].mxu1 }
 0x10d   : > { %563 = vst [vmem:[%s951_s25 + $0x70] sm:$0xff] %v847_v13  ;;  %v470_v16 = vpop.f32.mrb[13].mxu0  ;;  %579 = vst [vmem:[%s951_s25 + $0xf0] sm:$0xff] %v1060_v15  ;;  %v534_v17 = vpop.f32.mrb[13].mxu1  ;;  %v636_v32 = vmul.f32 %v847_v13, %v847_v13 }
 0x10e   : > { %561 = vst [vmem:[%s951_s25 + $0x60] sm:$0xff] %v470_v16  ;;  %v593_v18 = vadd.f32 %v592_v14, %v470_v16  ;;  %v634_v19 = vmul.f32 %v470_v16, %v470_v16  ;;  %v664_v20 = vadd.f32 %v663_v12, %v633_v11  ;;  %v848_v21 = vpop.f32.mrb[14].mxu0  ;;  %577 = vst [vmem:[%s951_s25 + $0xe0] sm:$0xff] %v534_v17  ;;  %v864_v23 = vpop.f32.mrb[14].mxu1 }
 0x10f   : > { %564 = vst [vmem:[%s951_s25 + $0x78] sm:$0xff] %v848_v21  ;;  %v473_v25 = vpop.f32.mrb[15].mxu0  ;;  %580 = vst [vmem:[%s951_s25 + $0xf8] sm:$0xff] %v864_v23  ;;  %v537_v27 = vpop.f32.mrb[15].mxu1  ;;  %v637_v35 = vmul.f32 %v848_v21, %v848_v21 }
 0x110   : > { %v665_v29 = vadd.f32 %v664_v20, %v634_v19  ;;  %562 = vst [vmem:[%s951_s25 + $0x68] sm:$0xff] %v473_v25  ;;  %v594_v30 = vadd.f32 %v593_v18, %v473_v25  ;;  %v635_v31 = vmul.f32 %v473_v25, %v473_v25  ;;  %578 = vst [vmem:[%s951_s25 + $0xe8] sm:$0xff] %v537_v27 }
 0x111   : > { %v651_v14 = vmul.f32 %v537_v27, %v537_v27 }
 0x112   : > { %v595_v33 = vadd.f32 %v847_v13, %v594_v30  ;;  %v666_v34 = vadd.f32 %v665_v29, %v635_v31 }
 0x114   : > { %v667_v36 = vadd.f32 %v666_v34, %v636_v32  ;;  %v596_v37 = vadd.f32 %v848_v21, %v595_v33 }
 0x116   : > { %v597_v40 = vadd.f32 %v596_v37, %v1005_v24  ;;  %v668_v42 = vadd.f32 %v667_v36, %v637_v35  ;;  %v642_v24 = vmul.f32 %v1025_v41, %v1025_v41 }
 0x118   : > { %v669_v43 = vadd.f32 %v668_v42, %v638_v38  ;;  %v598_v44 = vadd.f32 %v597_v40, %v1015_v28 }
 0x11a   : > { %v599_v49 = vadd.f32 %v1000_v22, %v598_v44  ;;  %v670_v50 = vadd.f32 %v669_v43, %v639_v45  ;;  %v644_v22 = vmul.f32 %v1020_v39, %v1020_v39 }
 0x11c   : > { %v671_v52 = vadd.f32 %v670_v50, %v640_v47  ;;  %v600_v53 = vadd.f32 %v1010_v26, %v599_v49  ;;  %v645_v26 = vmul.f32 %v1030_v46, %v1030_v46 }
 0x11e   : > { %v601_v54 = vadd.f32 %v600_v53, %v1025_v41  ;;  %v672_v55 = vadd.f32 %v671_v52, %v641_v51  ;;  %v646_v41 = vmul.f32 %v1045_v61, %v1045_v61 }
 0x120   : > { %v673_v56 = vadd.f32 %v672_v55, %v642_v24  ;;  %v602_v28 = vadd.f32 %v601_v54, %v1035_v48 }
 0x122   : > { %v603_v58 = vadd.f32 %v1020_v39, %v602_v28  ;;  %v674_v60 = vadd.f32 %v673_v56, %v643_v57  ;;  %v648_v39 = vmul.f32 %v1040_v59, %v1040_v59 }
 0x124   : > { %v675_v62 = vadd.f32 %v674_v60, %v644_v22  ;;  %v604_v63 = vadd.f32 %v1030_v46, %v603_v58  ;;  %v649_v46 = vmul.f32 %v1050_v2, %v1050_v2 }
 0x126   : > { %v605_v0 = vadd.f32 %v604_v63, %v1045_v61  ;;  %v676_v1 = vadd.f32 %v675_v62, %v645_v26  ;;  %v650_v61 = vmul.f32 %v534_v17, %v534_v17 }
 0x128   : > { %v677_v3 = vadd.f32 %v676_v1, %v646_v41  ;;  %v606_v48 = vadd.f32 %v605_v0, %v1055_v4  ;;  %v652_v4 = vmul.f32 %v1060_v15, %v1060_v15 }
 0x12a   : > { %v607_v6 = vadd.f32 %v1040_v59, %v606_v48  ;;  %v678_v7 = vadd.f32 %v677_v3, %v647_v5  ;;  %v653_v59 = vmul.f32 %v864_v23, %v864_v23 }
 0x12c   : > { %v679_v8 = vadd.f32 %v678_v7, %v648_v39  ;;  %v608_v9 = vadd.f32 %v1050_v2, %v607_v6 }
 0x12e   : > { %v609_v10 = vadd.f32 %v608_v9, %v534_v17  ;;  %v680_v11 = vadd.f32 %v679_v8, %v649_v46 }
 0x130   : > { %v681_v12 = vadd.f32 %v680_v11, %v650_v61  ;;  %v610_v13 = vadd.f32 %v609_v10, %v537_v27  ;;  %v581_v27 = vld [vmem:[%s1128_s3] sm:$0x1] }
 0x132   : > { %v611_v16 = vadd.f32 %v1060_v15, %v610_v13  ;;  %v682_v18 = vadd.f32 %v681_v12, %v651_v14 }
 0x134   : > { %v612_v19 = vadd.f32 %v864_v23, %v611_v16  ;;  %v683_v20 = vadd.f32 %v682_v18, %v652_v4  ;;  %v621_v23 = vld [vmem:[%s1129_s4] sm:$0x1] }
 0x136   : > { %v613_v21 = vrot.slane %v612_v19, 4  ;;  %v684_v25 = vadd.f32 %v683_v20, %v653_v59 }
 0x138   : > { %v614_v29 = vadd.f32 %v613_v21, %v612_v19  ;;  %v685_v30 = vrot.slane %v684_v25, 4 }
 0x13a   : > { %v615_v2 = vrot.slane %v614_v29, 2  ;;  %v686_v31 = vadd.f32 %v685_v30, %v684_v25 }
 0x13c   : > { %v616_v17 = vadd.f32 %v615_v2, %v614_v29  ;;  %v687_v32 = vrot.slane %v686_v31, 2 }
 0x13e   : > { %v617_v33 = vrot.slane %v616_v17, 1  ;;  %v688_v34 = vadd.f32 %v687_v32, %v686_v31 }
 0x140   : > { %v618_v35 = vadd.f32 %v617_v33, %v616_v17  ;;  %v689_v15 = vrot.slane %v688_v34, 1 }
 0x142   : > { %v619_v36 = vadd.f32 %v618_v35, %v581_v27  ;;  %v690_v37 = vadd.f32 %v689_v15, %v688_v34 }
 0x144   : > { %620 = vst [vmem:[%s1128_s3] sm:$0x1] %v619_v36  ;;  %v691_v38 = vadd.f32 %v690_v37, %v621_v23 }
 0x146   : > { %692 = vst [vmem:[%s1129_s4] sm:$0x1] %v691_v38 }
 0x147 PF: > { %s15_s15 = sadd.s32 1, %s907_s15  }
 0x148   : > { %p12_p5 = scmp.ge.s32.totalorder %s15_s15, 4  }
 0x14a   :  { %14 = sbr.rel (!%p12_p5) target bundleno = 1 (0x1), region = 78 }

</bundles_post_ra>
